<compile_context>
chip_gen: v5e
topology: v5e:2x2
jax: 0.10.0
libtpu: 0.0.40
codegen_flags: <defaults>
</compile_context>

<pallas_src>
import jax
import jax.numpy as jnp
from jax.experimental import pallas as pl
from jax.experimental.pallas import tpu as pltpu


def _round_up(n, m):
    return ((n + m - 1) // m) * m


def _cdiv(a, b):
    return -(-a // b)


def _vmem_capacity_bytes():
    try:
        return int(pltpu.get_tpu_info().vmem_capacity_bytes)
    except Exception:
        return 64 * 1024 * 1024  # conservative default (v7x per-TC VMEM)


def _linear_logsoftmax_kernel(x_ref, w_ref, b_ref, o_ref):
    # x_ref: (TB, D) input dtype — cast to the MXU compute dtype in-kernel so
    #        the wrapper never pays an extra HBM pad/cast pass over x.
    # w_ref: (D, Cp) compute dtype (pre-transposed, class-padded, resident).
    # b_ref: (1, Cp) f32 — padded classes hold -1e30 so they never win the max
    #        and contribute exp()=0 to the sum (no inf-inf NaNs).
    # o_ref: (TB, Cp) f32.
    logits = jnp.dot(x_ref[...].astype(w_ref.dtype), w_ref[...],
                     preferred_element_type=jnp.float32) + b_ref[...]
    m = jnp.max(logits, axis=-1, keepdims=True)
    # Reuse the output buffer for the shifted logits: only one (TB, Cp) f32
    # temporary (logits) stays live besides the output tile.
    o_ref[...] = logits - m
    lse = jnp.log(jnp.sum(jnp.exp(o_ref[...]), axis=-1, keepdims=True))
    o_ref[...] = o_ref[...] - lse


def prepare_params(weight, bias, *, compute_dtype=jnp.bfloat16):
    """One-time (hoistable) weight preprocessing: transpose + cast + class pad.

    Returns (weight_t, bias_p, nclass). Cache across steps for frozen params
    (or rely on jit constant folding) so this HBM pass is not paid per call.
    """
    C, D = weight.shape
    assert bias.shape == (C,)
    # 256-granular class padding keeps the 2x256^2 MXU (v6e/v7x) fully fed for
    # large C; 128 keeps padding waste minimal for small C.
    # TODO(synk): keep 128-granularity on v5e (4x128 MXU) once the chip
    # version is exposed reliably from get_tpu_info.
    gran = 256 if C >= 1024 else 128
    C_pad = _round_up(max(C, 128), gran)
    weight_t = jnp.pad(weight.T.astype(compute_dtype), ((0, 0), (0, C_pad - C)))
    bias_p = jnp.pad(bias.astype(jnp.float32), (0, C_pad - C),
                     constant_values=jnp.float32(-1e30)).reshape(1, C_pad)
    return weight_t, bias_p, C


def linear_logsoftmax_prepared(x, weight_t, bias_p, nclass, *, block_b=None):
    B, D = x.shape
    D2, C_pad = weight_t.shape
    assert D == D2 and bias_p.shape == (1, C_pad)

    x_itemsize = jnp.dtype(x.dtype).itemsize
    w_itemsize = jnp.dtype(weight_t.dtype).itemsize

    # Batch-tile alignment for the pipelined x / out tiles.
    align = 8 if x_itemsize >= 4 else 16

    # Generation-aware VMEM budget: ~64 MiB per TC on v7x, 128 MiB on v5e/v6e.
    vmem_cap = _vmem_capacity_bytes()
    big_vmem = vmem_cap >= 100 * 1024 * 1024
    budget_cap = (96 if big_vmem else 44) * 1024 * 1024
    max_block_b = 1024 if big_vmem else 512

    # Resident operands (single-buffered: their index_map is grid-invariant).
    w_bytes = C_pad * D * w_itemsize + C_pad * 4

    def tile_bytes(tb):
        # 2x double-buffered x and out tiles + in-kernel compute-dtype cast of
        # x + ~2 live (tb, C_pad) f32 temporaries (logits / exp).
        return (2 * tb * D * x_itemsize + tb * D * w_itemsize
                + 2 * tb * C_pad * 4 + 2 * tb * C_pad * 4)

    if block_b is None:
        # Balanced tiles: minimize batch-pad waste instead of blindly capping.
        n_tiles = max(1, _cdiv(B, max_block_b))
        block_b = _cdiv(B, n_tiles)
    block_b = max(align, _round_up(block_b, align))

    while block_b > align and w_bytes + tile_bytes(block_b) > budget_cap:
        block_b = max(align, _round_up(block_b // 2, align))

    # Guarantee >= 2 grid steps so ("parallel",) shards across both
    # TensorCores on v7x (also halves per-core VMEM pressure).
    if _cdiv(B, block_b) == 1 and B > align:
        block_b = max(align, _round_up(_cdiv(B, 2), align))

    if block_b > B:
        block_b = B  # single full-extent block (always a legal block shape)

    grid = (_cdiv(B, block_b),)

    vmem_need = w_bytes + tile_bytes(block_b)
    vmem_limit = int(min(max(vmem_need + (8 << 20), 32 << 20),
                         (112 if big_vmem else 56) << 20))

    cost = pl.CostEstimate(
        flops=2 * B * D * C_pad,
        transcendentals=B * C_pad,
        bytes_accessed=(B * D * x_itemsize + C_pad * D * w_itemsize
                        + C_pad * 4 + B * C_pad * 4),
    )

    def call(single_buffer_resident):
        resident_kwargs = ({"pipeline_mode": pl.Buffered(1)}
                           if single_buffer_resident else {})
        return pl.pallas_call(
            _linear_logsoftmax_kernel,
            out_shape=jax.ShapeDtypeStruct((B, C_pad), jnp.float32),
            grid=grid,
            in_specs=[
                pl.BlockSpec((block_b, D), lambda i: (i, 0)),      # x: pipelined
                pl.BlockSpec((D, C_pad), lambda i: (0, 0),         # W^T: resident
                             **resident_kwargs),
                pl.BlockSpec((1, C_pad), lambda i: (0, 0),         # bias: resident
                             **resident_kwargs),
            ],
            out_specs=pl.BlockSpec((block_b, C_pad), lambda i: (i, 0)),
            compiler_params=pltpu.CompilerParams(
                dimension_semantics=("parallel",),
                vmem_limit_bytes=vmem_limit,
            ),
            cost_estimate=cost,
        )(x, weight_t, bias_p)

    try:
        out_pad = call(True)
    except Exception:
        # Fallback if this jax version rejects single-buffered resident specs.
        out_pad = call(False)

    return out_pad if C_pad == nclass else out_pad[:, :nclass]


def linear_logsoftmax(x, weight, bias, *, compute_dtype=jnp.bfloat16,
                      block_b=None):
    """Torch layout: x (B, D), weight (C, D), bias (C,) -> (B, C) float32."""
    weight_t, bias_p, C = prepare_params(weight, bias,
                                         compute_dtype=compute_dtype)
    return linear_logsoftmax_prepared(x, weight_t, bias_p, C, block_b=block_b)


def _reference(x, weight, bias):
    logits = x @ weight.T + bias
    return jax.nn.log_softmax(logits, axis=1)


if __name__ == "__main__":
    # Small shapes consistent with the module's forward: (batch, input_dim)
    batch, input_dim, nclass = 8, 32, 16

    key = jax.random.PRNGKey(0)
    kx, kw, kb = jax.random.split(key, 3)

    x = jax.random.normal(kx, (batch, input_dim), dtype=jnp.float32)
    # Deterministic init mimicking nn.Linear's uniform(-1/sqrt(D), 1/sqrt(D))
    bound = 1.0 / (input_dim ** 0.5)
    weight = jax.random.uniform(kw, (nclass, input_dim), jnp.float32,
                                -bound, bound)
    bias = jax.random.uniform(kb, (nclass,), jnp.float32, -bound, bound)

    ref = _reference(x, weight, bias)

    # f32 MXU path: bit-level agreement with the reference.
    out_f32 = jax.block_until_ready(
        linear_logsoftmax(x, weight, bias, compute_dtype=jnp.float32))
    assert out_f32.shape == (batch, nclass)
    assert jnp.allclose(out_f32, ref, atol=1e-5, rtol=1e-5), "f32 mismatch"

    # Default bf16 MXU path (f32 accumulation + f32 softmax): bf16 tolerance.
    out_bf16 = jax.block_until_ready(linear_logsoftmax(x, weight, bias))
    assert out_bf16.shape == (batch, nclass)
    assert jnp.allclose(out_bf16, ref, atol=3e-2, rtol=3e-2), "bf16 mismatch"

    print("KERNEL_OK")
</pallas_src>

<mosaic_0001>
module attributes {stable_mosaic.version = 11 : i64} {
  func.func @_linear_logsoftmax_kernel(%arg0: i32, %arg1: memref<8x32xf32, #tpu.memory_space<vmem>>, %arg2: memref<32x128xf32, #tpu.memory_space<vmem>>, %arg3: memref<1x128xf32, #tpu.memory_space<vmem>>, %arg4: memref<8x128xf32, #tpu.memory_space<vmem>>) attributes {dimension_semantics = [#tpu.dimension_semantics<parallel>], iteration_bounds = array<i64: 1>, scalar_prefetch = 0 : i64, scratch_operands = 0 : i64, tpu.core_type = #tpu.core_type<tc>, window_params = [{transform_indices = @transform_0, window_bounds = array<i64: 8, 32>}, {pipeline_mode = #tpu.pipeline_mode<synchronous>, transform_indices = @transform_1, window_bounds = array<i64: 32, 128>}, {pipeline_mode = #tpu.pipeline_mode<synchronous>, transform_indices = @transform_2, window_bounds = array<i64: 1, 128>}, {transform_indices = @transform_3, window_bounds = array<i64: 8, 128>}]} {
    %c0 = arith.constant 0 : index
    %c0_0 = arith.constant 0 : index
    %0 = vector.load %arg1[%c0, %c0_0] : memref<8x32xf32, #tpu.memory_space<vmem>>, vector<8x32xf32>
    %c0_1 = arith.constant 0 : index
    %c0_2 = arith.constant 0 : index
    %1 = vector.load %arg2[%c0_1, %c0_2] : memref<32x128xf32, #tpu.memory_space<vmem>>, vector<32x128xf32>
    %cst = arith.constant dense<0.000000e+00> : vector<8x128xf32>
    %2 = tpu.matmul %0, %1, %cst {dimension_numbers = #tpu.dot_dimension_numbers<[1], [0], [0], [1], [0, 0, 1, 1], [], []>} : vector<8x32xf32>, vector<32x128xf32>, vector<8x128xf32> -> vector<8x128xf32>
    %c0_3 = arith.constant 0 : index
    %c0_4 = arith.constant 0 : index
    %3 = vector.load %arg3[%c0_3, %c0_4] : memref<1x128xf32, #tpu.memory_space<vmem>>, vector<1x128xf32>
    %4 = vector.broadcast %3 : vector<1x128xf32> to vector<8x128xf32>
    %5 = arith.addf %2, %4 : vector<8x128xf32>
    %cst_5 = arith.constant dense<0xFF800000> : vector<8xf32>
    %6 = vector.multi_reduction <maximumf>, %5, %cst_5 [1] : vector<8x128xf32> to vector<8xf32>
    %7 = vector.shape_cast %6 : vector<8xf32> to vector<8x1xf32>
    %8 = vector.broadcast %7 : vector<8x1xf32> to vector<8x128xf32>
    %9 = arith.subf %5, %8 : vector<8x128xf32>
    %c0_6 = arith.constant 0 : index
    %c0_7 = arith.constant 0 : index
    %10 = vector.load %arg4[%c0_6, %c0_7] : memref<8x128xf32, #tpu.memory_space<vmem>>, vector<8x128xf32>
    tpu.vector_store %arg4[%c0_6, %c0_7], %9 {strides = array<i32>} : memref<8x128xf32, #tpu.memory_space<vmem>>, vector<8x128xf32>,
    %c0_8 = arith.constant 0 : index
    %c0_9 = arith.constant 0 : index
    %11 = vector.load %arg4[%c0_8, %c0_9] : memref<8x128xf32, #tpu.memory_space<vmem>>, vector<8x128xf32>
    %12 = math.exp %11 : vector<8x128xf32>
    %cst_10 = arith.constant dense<0.000000e+00> : vector<8xf32>
    %13 = vector.multi_reduction <add>, %12, %cst_10 [1] : vector<8x128xf32> to vector<8xf32>
    %14 = vector.shape_cast %13 : vector<8xf32> to vector<8x1xf32>
    %15 = math.log %14 : vector<8x1xf32>
    %c0_11 = arith.constant 0 : index
    %c0_12 = arith.constant 0 : index
    %16 = vector.load %arg4[%c0_11, %c0_12] : memref<8x128xf32, #tpu.memory_space<vmem>>, vector<8x128xf32>
    %17 = vector.broadcast %15 : vector<8x1xf32> to vector<8x128xf32>
    %18 = arith.subf %16, %17 : vector<8x128xf32>
    %c0_13 = arith.constant 0 : index
    %c0_14 = arith.constant 0 : index
    %19 = vector.load %arg4[%c0_13, %c0_14] : memref<8x128xf32, #tpu.memory_space<vmem>>, vector<8x128xf32>
    tpu.vector_store %arg4[%c0_13, %c0_14], %18 {strides = array<i32>} : memref<8x128xf32, #tpu.memory_space<vmem>>, vector<8x128xf32>,
    return
  }
  func.func @transform_0(%arg0: i32) -> (i32, i32) {
    %c0_i32 = arith.constant 0 : i32
    %c0_i32_0 = arith.constant 0 : i32
    return %arg0, %c0_i32 : i32, i32
  }
  func.func @transform_1(%arg0: i32) -> (i32, i32) {
    %c0_i32 = arith.constant 0 : i32
    %c0_i32_0 = arith.constant 0 : i32
    %c0_i32_1 = arith.constant 0 : i32
    return %c0_i32, %c0_i32_0 : i32, i32
  }
  func.func @transform_2(%arg0: i32) -> (i32, i32) {
    %c0_i32 = arith.constant 0 : i32
    %c0_i32_0 = arith.constant 0 : i32
    %c0_i32_1 = arith.constant 0 : i32
    return %c0_i32, %c0_i32_0 : i32, i32
  }
  func.func @transform_3(%arg0: i32) -> (i32, i32) {
    %c0_i32 = arith.constant 0 : i32
    %c0_i32_0 = arith.constant 0 : i32
    return %arg0, %c0_i32 : i32, i32
  }
}

module attributes {stable_mosaic.version = 11 : i64} {
  func.func @_linear_logsoftmax_kernel(%arg0: i32, %arg1: memref<8x32xf32, #tpu.memory_space<vmem>>, %arg2: memref<32x128xf32, #tpu.memory_space<vmem>>, %arg3: memref<1x128xf32, #tpu.memory_space<vmem>>, %arg4: memref<8x128xf32, #tpu.memory_space<vmem>>) attributes {dimension_semantics = [#tpu.dimension_semantics<parallel>], iteration_bounds = array<i64: 1>, scalar_prefetch = 0 : i64, scratch_operands = 0 : i64, tpu.core_type = #tpu.core_type<tc>, window_params = [{transform_indices = @transform_0, window_bounds = array<i64: 8, 32>}, {pipeline_mode = #tpu.pipeline_mode<synchronous>, transform_indices = @transform_1, window_bounds = array<i64: 32, 128>}, {pipeline_mode = #tpu.pipeline_mode<synchronous>, transform_indices = @transform_2, window_bounds = array<i64: 1, 128>}, {transform_indices = @transform_3, window_bounds = array<i64: 8, 128>}]} {
    %c0 = arith.constant 0 : index
    %c0_0 = arith.constant 0 : index
    %0 = vector.load %arg1[%c0, %c0_0] : memref<8x32xf32, #tpu.memory_space<vmem>>, vector<8x32xf32>
    %c0_1 = arith.constant 0 : index
    %c0_2 = arith.constant 0 : index
    %1 = vector.load %arg2[%c0_1, %c0_2] : memref<32x128xf32, #tpu.memory_space<vmem>>, vector<32x128xf32>
    %cst = arith.constant dense<0.000000e+00> : vector<8x128xf32>
    %2 = tpu.matmul %0, %1, %cst {dimension_numbers = #tpu.dot_dimension_numbers<[1], [0], [0], [1], [0, 0, 1, 1], [], []>} : vector<8x32xf32>, vector<32x128xf32>, vector<8x128xf32> -> vector<8x128xf32>
    %c0_3 = arith.constant 0 : index
    %c0_4 = arith.constant 0 : index
    %3 = vector.load %arg3[%c0_3, %c0_4] : memref<1x128xf32, #tpu.memory_space<vmem>>, vector<1x128xf32>
    %4 = vector.broadcast %3 : vector<1x128xf32> to vector<8x128xf32>
    %5 = arith.addf %2, %4 : vector<8x128xf32>
    %cst_5 = arith.constant dense<0xFF800000> : vector<8xf32>
    %6 = vector.multi_reduction <maximumf>, %5, %cst_5 [1] : vector<8x128xf32> to vector<8xf32>
    %7 = vector.shape_cast %6 : vector<8xf32> to vector<8x1xf32>
    %8 = vector.broadcast %7 : vector<8x1xf32> to vector<8x128xf32>
    %9 = arith.subf %5, %8 : vector<8x128xf32>
    %c0_6 = arith.constant 0 : index
    %c0_7 = arith.constant 0 : index
    %10 = vector.load %arg4[%c0_6, %c0_7] : memref<8x128xf32, #tpu.memory_space<vmem>>, vector<8x128xf32>
    tpu.vector_store %arg4[%c0_6, %c0_7], %9 {strides = array<i32>} : memref<8x128xf32, #tpu.memory_space<vmem>>, vector<8x128xf32>,
    %c0_8 = arith.constant 0 : index
    %c0_9 = arith.constant 0 : index
    %11 = vector.load %arg4[%c0_8, %c0_9] : memref<8x128xf32, #tpu.memory_space<vmem>>, vector<8x128xf32>
    %12 = math.exp %11 : vector<8x128xf32>
    %cst_10 = arith.constant dense<0.000000e+00> : vector<8xf32>
    %13 = vector.multi_reduction <add>, %12, %cst_10 [1] : vector<8x128xf32> to vector<8xf32>
    %14 = vector.shape_cast %13 : vector<8xf32> to vector<8x1xf32>
    %15 = math.log %14 : vector<8x1xf32>
    %c0_11 = arith.constant 0 : index
    %c0_12 = arith.constant 0 : index
    %16 = vector.load %arg4[%c0_11, %c0_12] : memref<8x128xf32, #tpu.memory_space<vmem>>, vector<8x128xf32>
    %17 = vector.broadcast %15 : vector<8x1xf32> to vector<8x128xf32>
    %18 = arith.subf %16, %17 : vector<8x128xf32>
    %c0_13 = arith.constant 0 : index
    %c0_14 = arith.constant 0 : index
    %19 = vector.load %arg4[%c0_13, %c0_14] : memref<8x128xf32, #tpu.memory_space<vmem>>, vector<8x128xf32>
    tpu.vector_store %arg4[%c0_13, %c0_14], %18 {strides = array<i32>} : memref<8x128xf32, #tpu.memory_space<vmem>>, vector<8x128xf32>,
    return
  }
  func.func @transform_0(%arg0: i32) -> (i32, i32) {
    %c0_i32 = arith.constant 0 : i32
    %c0_i32_0 = arith.constant 0 : i32
    return %arg0, %c0_i32 : i32, i32
  }
  func.func @transform_1(%arg0: i32) -> (i32, i32) {
    %c0_i32 = arith.constant 0 : i32
    %c0_i32_0 = arith.constant 0 : i32
    %c0_i32_1 = arith.constant 0 : i32
    return %c0_i32, %c0_i32_0 : i32, i32
  }
  func.func @transform_2(%arg0: i32) -> (i32, i32) {
    %c0_i32 = arith.constant 0 : i32
    %c0_i32_0 = arith.constant 0 : i32
    %c0_i32_1 = arith.constant 0 : i32
    return %c0_i32, %c0_i32_0 : i32, i32
  }
  func.func @transform_3(%arg0: i32) -> (i32, i32) {
    %c0_i32 = arith.constant 0 : i32
    %c0_i32_0 = arith.constant 0 : i32
    return %arg0, %c0_i32 : i32, i32
  }
}

</mosaic_0001>

<bundles_post_ra>
// kernel: tpu_custom_call.1
= control target key start
LH: loop header
LB: loop body
LE: loop exit
PB: predicated region body
PF: predicated region fallthrough
CT: control target
= control target key end

     0   :  { %8 = vsyncpa [#allocation3], 0  ;;  %s235_s0 = inlined_call_operand.hbm [shape: f32[8,32], index: 0, kind: input, shape index: {}]   ;;  %s236_s1 = inlined_call_operand.hbm [shape: f32[32,128], index: 1, kind: input, shape index: {}]   ;;  %s237_s2 = inlined_call_operand.vmem [shape: f32[1,128], index: 2, kind: input, shape index: {}]   ;;  %s238_s3 = inlined_call_operand.hbm [shape: f32[8,128], index: 3, kind: output, shape index: {}]  }
   0x1   :  { %9 = vsyncpa [#allocation6], 0 }
   0x2   :  { %10 = vsyncpa [#allocation4], 0  ;;  %s16_s14 = sshll.u32 %s235_s0, 4  ;;  %s198_s15 = smov [#allocation2]   ;;  %s17_s14 = int_to_ptr.hbm [resolvable:$true] %s16_s14 }
   0x3   :  { %s18_s16 = sshll.u32 %s198_s15, 4  ;;  %s26_s19 = sshll.u32 %s236_s1, 4  ;;  %s19_s16 = int_to_ptr.vmem [resolvable:$true] %s18_s16  ;;  %s27_s19 = int_to_ptr.hbm [resolvable:$true] %s26_s19 }
   0x4   :  { %21 = dma.hbm_to_vmem [thread:$0]  %s17_s14, 128, %s19_s16, [#allocation3]  }
   0x5   :  { %s199_s20 = smov [#allocation5]   ;;  %s200_s22 = smov 128  }
   0x6   :  { %s28_s21 = sshll.u32 %s199_s20, 4  ;;  %s201_s23 = smov 8   ;;  %s29_s21 = int_to_ptr.vmem [resolvable:$true] %s28_s21 }
   0x7   :  { %34 = dma.hbm_to_vmem [thread:$0]  %s27_s19, 512, %s29_s21, [#allocation6], %s200_s22, %s200_s22, %s201_s23  }
   0x8   :  { %192 = dma.done.wait [#allocation3], 128  }
   0x9   :  { %193 = vsyncadd [#allocation3], 4294967168 }
   0xa   :  { %194 = dma.done.wait [#allocation6], 512  }
   0xb   :  { %195 = vsyncadd [#allocation6], 4294966784  ;;  %v49_v0 = vld [vmem:[#allocation5 + $0x18] sm:$0xff]  ;;  %v48_v1 = vld [vmem:[#allocation5 + $0x10] sm:$0xff]  ;;  %vm54_vm0 = vcmask 261120   ;;  %s202_s24 = smov [#allocation7]  }
   0xc   :  { %70 = vmatpush.msra.mxu0 %v49_v0  ;;  %v47_v2 = vld [vmem:[#allocation5 + $0x8] sm:$0xff]  ;;  %v46_v3 = vld [vmem:[#allocation5] sm:$0xff]  ;;  %v45_v4 = vld [vmem:[#allocation2] sm:$0xff]  ;;  %s96_s25 = sshll.u32 %s202_s24, 4  ;;  %s98_s28 = sshll.u32 %s238_s3, 4  ;;  %s97_s25 = int_to_ptr.vmem [resolvable:$true] %s96_s25  ;;  %s99_s28 = int_to_ptr.hbm [resolvable:$true] %s98_s28 }
   0xd   :  { %v115_v5 = vld [vmem:[%s237_s2] ss:$0 sm:$0xff] }
   0xe   :  { %71 = vmatpush.msra.mxu0 %v48_v1 }
  0x10   :  { %72 = vmatpush.msra.mxu0 %v47_v2 }
  0x12   :  { %73 = vmatpush.msra.mxu0 %v46_v3 }
  0x13   :  { %109 = vmatmul.msk.f32.vlgmr.msra.gmra.mxu0 %vm54_vm0, %v45_v4 }
  0x90   :  { %v75_v6 = vpop.f32.mrf.mxu0 }
  0x91   :  { %v76_v7 = vadd.f32 %v115_v5, %v75_v6 }
  0x93   :  { %78 = vmax.xlane.f32.xlu0 %v76_v7 }
 0x106   :  { %v79_v8 = vpop.xlane.xlu0 %78 }
 0x107   :  { %v80_v9 = vsub.f32 %v76_v7, %v79_v8 }
 0x109   :  { %v83_v10 = vmul.f32 1.442695, %v80_v9 }
 0x10b   :  { %116 = vpow2.f32 %v83_v10 }
 0x111   :  { %v117_v11 = vpop.eup %116 }
 0x112   :  { %85 = vadd.xlane.f32.xlu0 %v117_v11 }
 0x185   :  { %v86_v12 = vpop.xlane.xlu0 %85 }
 0x186   :  { %118 = vlog2.f32 %v86_v12 }
 0x18c   :  { %v119_v13 = vpop.eup %118 }
 0x18d   :  { %v88_v14 = vmul.f32 0.6931472, %v119_v13 }
 0x18f   :  { %v89_v15 = vsub.f32 %v80_v9, %v88_v14 }
 0x191   :  { %90 = vst [vmem:[#allocation7] sm:$0xff] %v89_v15 }
 0x192   :  { %101 = dma.vmem_to_hbm [thread:$0]  %s97_s25, 128, %s99_s28, [#allocation4]  }
 0x193   :  { %196 = dma.done.wait [#allocation4], 128  }
 0x194   :  { %197 = vsyncadd [#allocation4], 4294967168 }
 0x195   :  { %106 = vsyncpa [#allocation3], 1 }
 0x196   :  { %107 = vsyncpa [#allocation6], 1 }
 0x197   :  { %108 = vsyncpa [#allocation4], 1 }

// kernel: tpu_custom_call.1
= control target key start
LH: loop header
LB: loop body
LE: loop exit
PB: predicated region body
PF: predicated region fallthrough
CT: control target
= control target key end

     0   :  { %8 = vsyncpa [#allocation3], 0  ;;  %s235_s0 = inlined_call_operand.hbm [shape: f32[8,32], index: 0, kind: input, shape index: {}]   ;;  %s236_s1 = inlined_call_operand.hbm [shape: f32[32,128], index: 1, kind: input, shape index: {}]   ;;  %s237_s2 = inlined_call_operand.vmem [shape: f32[1,128], index: 2, kind: input, shape index: {}]   ;;  %s238_s3 = inlined_call_operand.hbm [shape: f32[8,128], index: 3, kind: output, shape index: {}]  }
   0x1   :  { %9 = vsyncpa [#allocation6], 0 }
   0x2   :  { %10 = vsyncpa [#allocation4], 0  ;;  %s16_s14 = sshll.u32 %s235_s0, 4  ;;  %s198_s15 = smov [#allocation2]   ;;  %s17_s14 = int_to_ptr.hbm [resolvable:$true] %s16_s14 }
   0x3   :  { %s18_s16 = sshll.u32 %s198_s15, 4  ;;  %s26_s19 = sshll.u32 %s236_s1, 4  ;;  %s19_s16 = int_to_ptr.vmem [resolvable:$true] %s18_s16  ;;  %s27_s19 = int_to_ptr.hbm [resolvable:$true] %s26_s19 }
   0x4   :  { %21 = dma.hbm_to_vmem [thread:$0]  %s17_s14, 128, %s19_s16, [#allocation3]  }
   0x5   :  { %s199_s20 = smov [#allocation5]   ;;  %s200_s22 = smov 128  }
   0x6   :  { %s28_s21 = sshll.u32 %s199_s20, 4  ;;  %s201_s23 = smov 8   ;;  %s29_s21 = int_to_ptr.vmem [resolvable:$true] %s28_s21 }
   0x7   :  { %34 = dma.hbm_to_vmem [thread:$0]  %s27_s19, 512, %s29_s21, [#allocation6], %s200_s22, %s200_s22, %s201_s23  }
   0x8   :  { %192 = dma.done.wait [#allocation3], 128  }
   0x9   :  { %193 = vsyncadd [#allocation3], 4294967168 }
   0xa   :  { %194 = dma.done.wait [#allocation6], 512  }
   0xb   :  { %195 = vsyncadd [#allocation6], 4294966784  ;;  %v49_v0 = vld [vmem:[#allocation5 + $0x18] sm:$0xff]  ;;  %v48_v1 = vld [vmem:[#allocation5 + $0x10] sm:$0xff]  ;;  %vm54_vm0 = vcmask 261120   ;;  %s202_s24 = smov [#allocation7]  }
   0xc   :  { %70 = vmatpush.msra.mxu0 %v49_v0  ;;  %v47_v2 = vld [vmem:[#allocation5 + $0x8] sm:$0xff]  ;;  %v46_v3 = vld [vmem:[#allocation5] sm:$0xff]  ;;  %v45_v4 = vld [vmem:[#allocation2] sm:$0xff]  ;;  %s96_s25 = sshll.u32 %s202_s24, 4  ;;  %s98_s28 = sshll.u32 %s238_s3, 4  ;;  %s97_s25 = int_to_ptr.vmem [resolvable:$true] %s96_s25  ;;  %s99_s28 = int_to_ptr.hbm [resolvable:$true] %s98_s28 }
   0xd   :  { %v115_v5 = vld [vmem:[%s237_s2] ss:$0 sm:$0xff] }
   0xe   :  { %71 = vmatpush.msra.mxu0 %v48_v1 }
  0x10   :  { %72 = vmatpush.msra.mxu0 %v47_v2 }
  0x12   :  { %73 = vmatpush.msra.mxu0 %v46_v3 }
  0x13   :  { %109 = vmatmul.msk.f32.vlgmr.msra.gmra.mxu0 %vm54_vm0, %v45_v4 }
  0x90   :  { %v75_v6 = vpop.f32.mrf.mxu0 }
  0x91   :  { %v76_v7 = vadd.f32 %v115_v5, %v75_v6 }
  0x93   :  { %78 = vmax.xlane.f32.xlu0 %v76_v7 }
 0x106   :  { %v79_v8 = vpop.xlane.xlu0 %78 }
 0x107   :  { %v80_v9 = vsub.f32 %v76_v7, %v79_v8 }
 0x109   :  { %v83_v10 = vmul.f32 1.442695, %v80_v9 }
 0x10b   :  { %116 = vpow2.f32 %v83_v10 }
 0x111   :  { %v117_v11 = vpop.eup %116 }
 0x112   :  { %85 = vadd.xlane.f32.xlu0 %v117_v11 }
 0x185   :  { %v86_v12 = vpop.xlane.xlu0 %85 }
 0x186   :  { %118 = vlog2.f32 %v86_v12 }
 0x18c   :  { %v119_v13 = vpop.eup %118 }
 0x18d   :  { %v88_v14 = vmul.f32 0.6931472, %v119_v13 }
 0x18f   :  { %v89_v15 = vsub.f32 %v80_v9, %v88_v14 }
 0x191   :  { %90 = vst [vmem:[#allocation7] sm:$0xff] %v89_v15 }
 0x192   :  { %101 = dma.vmem_to_hbm [thread:$0]  %s97_s25, 128, %s99_s28, [#allocation4]  }
 0x193   :  { %196 = dma.done.wait [#allocation4], 128  }
 0x194   :  { %197 = vsyncadd [#allocation4], 4294967168 }
 0x195   :  { %106 = vsyncpa [#allocation3], 1 }
 0x196   :  { %107 = vsyncpa [#allocation6], 1 }
 0x197   :  { %108 = vsyncpa [#allocation4], 1 }

</bundles_post_ra>
